<compile_context>
chip_gen: v6e
topology: v6e:2x2x1
jax: 0.10.0
libtpu: 0.0.40
codegen_flags: <defaults>
</compile_context>

<pallas_src>
import functools
import math

import jax
import jax.numpy as jnp
from jax import lax
from jax.experimental import pallas as pl
from jax.experimental.pallas import tpu as pltpu


def sae_kernel(x_ref, *refs, rows_total, tb, noise_scale, has_row_pad, mxu_dtype):
    """Fused noised-encode chain + pre-composed decode. One batch tile per grid step."""
    use_noise = noise_scale > 0.0
    if use_noise:
        (z1_ref, z2_ref, z3_ref,
         w1e_ref, b1e_ref, w2e_ref, b2e_ref, w3e_ref, b3e_ref,
         wd_ref, bd_ref, out_ref) = refs
        z_refs = (z1_ref, z2_ref, z3_ref)
    else:
        (w1e_ref, b1e_ref, w2e_ref, b2e_ref, w3e_ref, b3e_ref,
         wd_ref, bd_ref, out_ref) = refs
        z_refs = (None, None, None)

    if has_row_pad:
        # Valid rows in this tile (only the last tile can be partially filled).
        rv = jnp.minimum(tb, rows_total - pl.program_id(0) * tb)

    def add_noise(f, z_ref):
        # noise = N(0,1) * f.std() * noise_scale   (torch .std(): unbiased, all elements).
        # Two-pass mean/var: cheap at these sizes and numerically safer than sum-of-squares.
        if not use_noise:
            return f
        d = f.shape[1]
        if has_row_pad:
            row_ids = lax.broadcasted_iota(jnp.int32, f.shape, 0)
            mask = row_ids < rv
            n = (rv * d).astype(jnp.float32)
            mean = jnp.sum(jnp.where(mask, f, 0.0)) / n
            diff = jnp.where(mask, f - mean, 0.0)
            var = jnp.sum(diff * diff) / jnp.maximum(n - 1.0, 1.0)
        else:
            n = float(tb * d)
            mean = jnp.sum(f) / n
            diff = f - mean
            var = jnp.sum(diff * diff) / (n - 1.0)
        std = jnp.sqrt(jnp.maximum(var, 0.0))
        return f + z_ref[...] * (std * noise_scale)

    def linear(f, w_ref, b_ref):
        w = w_ref[...]
        if mxu_dtype is not None:          # bf16 MXU operands on v6e/v7x; f32 accumulation.
            f = f.astype(mxu_dtype)
            w = w.astype(mxu_dtype)
        return jnp.dot(f, w, preferred_element_type=jnp.float32) + b_ref[...]

    x = x_ref[...]
    # Encode chain (per-layer input noising, as in DAE.forward).
    a1 = jnp.maximum(linear(add_noise(x, z_refs[0]), w1e_ref, b1e_ref), 0.0)
    a2 = jnp.maximum(linear(add_noise(a1, z_refs[1]), w2e_ref, b2e_ref), 0.0)
    a3 = jnp.maximum(linear(add_noise(a2, z_refs[2]), w3e_ref, b3e_ref), 0.0)
    # Decoder chain pre-composed in the wrapper into a single affine map (exact).
    out_ref[...] = linear(a3, wd_ref, bd_ref)


def _round_up(n, m):
    return ((n + m - 1) // m) * m


def _pad_rows(a, rows):
    if a.shape[0] == rows:
        return a
    return jnp.zeros((rows,) + a.shape[1:], a.dtype).at[: a.shape[0]].set(a)


def _init_linear(key, in_features, out_features):
    """Deterministic init matching nn.Linear default bounds: U(-1/sqrt(in), 1/sqrt(in))."""
    kw, kb = jax.random.split(key)
    bound = 1.0 / math.sqrt(in_features)
    # stored already transposed: (in, out) -> kernel computes y = x @ W + b
    w_t = jax.random.uniform(kw, (in_features, out_features), jnp.float32, -bound, bound)
    b = jax.random.uniform(kb, (1, out_features), jnp.float32, -bound, bound)
    return w_t, b


def make_params(key, input_shape, encode_shape):
    dims = [
        (input_shape, encode_shape),           # ae1
        (encode_shape, encode_shape - 2),      # ae2
        (encode_shape - 2, encode_shape - 4),  # ae3
    ]
    keys = jax.random.split(key, 6)
    params = {}
    for i, (din, dout) in enumerate(dims, start=1):
        params[f"w{i}e"], params[f"b{i}e"] = _init_linear(keys[2 * i - 2], din, dout)
        # decoder: Linear(dout -> din), stored transposed as (dout, din)
        params[f"w{i}d"], params[f"b{i}d"] = _init_linear(keys[2 * i - 1], dout, din)
    return params, dims


def stacked_autoencoder_forward(x, params, dims, noise=None, noise_scale=0.05,
                                tile_rows=1024, mxu_dtype=None):
    """Fused forward. `noise`: tuple of three (B, d_k) standard-normal arrays (or None)."""
    B, d_in = x.shape
    TB = min(tile_rows, _round_up(B, 8))       # row tile (multiple of 8 sublanes)
    B_pad = _round_up(B, TB)
    n_tiles = B_pad // TB
    has_row_pad = B_pad != B
    use_noise = noise_scale > 0.0

    hp = jax.lax.Precision.HIGHEST

    # ---- wrapper-side (cheap, one-off) parameter prep --------------------------------
    # Pre-compose the three decoders: W_dec = W3d @ W2d @ W1d ; b_dec chained likewise.
    wd = jnp.dot(jnp.dot(params["w3d"], params["w2d"], precision=hp), params["w1d"], precision=hp)
    bd = (jnp.dot(jnp.dot(params["b3d"], params["w2d"], precision=hp), params["w1d"], precision=hp)
          + jnp.dot(params["b2d"], params["w1d"], precision=hp)
          + params["b1d"])

    x_in = _pad_rows(x.astype(jnp.float32), B_pad)

    row_spec = lambda d: pl.BlockSpec((TB, d), lambda i: (i, 0))
    const_spec = lambda shape: pl.BlockSpec(shape, lambda i: (0, 0))

    inputs = [x_in]
    in_specs = [row_spec(d_in)]

    if use_noise:
        if noise is None:
            raise ValueError("noise_scale > 0 requires standard-normal `noise` arrays")
        for k, z in enumerate(noise):
            assert z.shape == (B, dims[k][0])
            zp = _pad_rows(z.astype(jnp.float32), B_pad)
            inputs.append(zp)
            in_specs.append(row_spec(dims[k][0]))

    weights = [params["w1e"], params["b1e"], params["w2e"], params["b2e"],
               params["w3e"], params["b3e"], wd, bd]
    for w in weights:
        inputs.append(w)
        in_specs.append(const_spec(w.shape))   # constant index map -> DMA'd once, VMEM-resident

    kernel = functools.partial(
        sae_kernel,
        rows_total=B, tb=TB,
        noise_scale=float(noise_scale),
        has_row_pad=has_row_pad,
        mxu_dtype=mxu_dtype,
    )

    matmul_flops = 2 * B_pad * (sum(di * do for di, do in dims) + dims[2][1] * d_in)
    io_bytes = 4 * (2 * B_pad * d_in)                         # x + out (native width)
    if use_noise:
        io_bytes += 4 * B_pad * sum(di for di, _ in dims)     # z1..z3
    io_bytes += 4 * (sum(di * do for di, do in dims) + dims[2][1] * d_in
                     + sum(do for _, do in dims) + d_in)      # weights + biases
    cost = pl.CostEstimate(
        flops=matmul_flops,
        transcendentals=3 * n_tiles if use_noise else 0,
        bytes_accessed=io_bytes,
    )

    out = pl.pallas_call(
        kernel,
        out_shape=jax.ShapeDtypeStruct((B_pad, d_in), jnp.float32),
        grid=(n_tiles,),
        in_specs=in_specs,
        out_specs=row_spec(d_in),
        compiler_params=pltpu.CompilerParams(
            dimension_semantics=("parallel",),
            vmem_limit_bytes=32 * 1024 * 1024,   # footprint is tiny; safe on v7x's 64 MiB VMEM
        ),
        cost_estimate=cost,
    )(*inputs)

    return out[:B] if has_row_pad else out


def _reference_forward(x, params, noise=None, noise_scale=0.0):
    """Plain-JAX reference using the UN-composed decoder chain (and the same noise draws)."""
    hp = jax.lax.Precision.HIGHEST
    a = x
    for i in (1, 2, 3):
        if noise is not None and noise_scale > 0.0:
            std = jnp.std(a, ddof=1)                       # torch .std(): unbiased, all elems
            a = a + noise[i - 1] * std * noise_scale
        a = jnp.maximum(jnp.dot(a, params[f"w{i}e"], precision=hp) + params[f"b{i}e"], 0.0)
    r = a
    for i in (3, 2, 1):
        r = jnp.dot(r, params[f"w{i}d"], precision=hp) + params[f"b{i}d"]
    return r


if __name__ == "__main__":
    B = 8
    INPUT_SHAPE = 32
    ENCODE_SHAPE = 16   # -> layer widths 32 -> 16 -> 14 -> 12

    root = jax.random.PRNGKey(0)
    k_params, k_data, k_noise = jax.random.split(root, 3)

    params, dims = make_params(k_params, INPUT_SHAPE, ENCODE_SHAPE)
    x = jax.random.normal(k_data, (B, INPUT_SHAPE), jnp.float32)

    # Standard-normal draws, shared by the kernel and the reference so the noisy path is
    # exactly verifiable (the in-kernel part only scales them by each layer's std * 0.05).
    kz = jax.random.split(k_noise, 3)
    noise = tuple(jax.random.normal(kz[i], (B, dims[i][0]), jnp.float32) for i in range(3))

    # Main run: denoising forward.
    out = stacked_autoencoder_forward(x, params, dims, noise=noise, noise_scale=0.05)
    out = jax.block_until_ready(out)
    assert out.shape == (B, INPUT_SHAPE)
    assert bool(jnp.all(jnp.isfinite(out)))

    # Correctness: full noisy forward vs plain-JAX reference.
    ref = _reference_forward(x, params, noise=noise, noise_scale=0.05)
    assert jnp.allclose(out, ref, atol=1e-3, rtol=1e-3), float(jnp.max(jnp.abs(out - ref)))

    # Correctness: noiseless path (exercises the pre-composed decoder and tiling alone).
    out_nz = stacked_autoencoder_forward(x, params, dims, noise=None, noise_scale=0.0)
    ref_nz = _reference_forward(x, params, noise=None, noise_scale=0.0)
    assert jnp.allclose(out_nz, ref_nz, atol=1e-3, rtol=1e-3)

    # bf16 MXU-operand fast path (v6e/v7x); f32 accumulation, loose tolerance by design.
    out_bf = stacked_autoencoder_forward(x, params, dims, noise=noise, noise_scale=0.05,
                                         mxu_dtype=jnp.bfloat16)
    out_bf = jax.block_until_ready(out_bf)
    assert jnp.allclose(out_bf, ref, atol=1e-1, rtol=1e-1)

    print("KERNEL_OK")
</pallas_src>

<mosaic_0001>
module attributes {stable_mosaic.version = 11 : i64} {
  func.func @sae_kernel(%arg0: i32, %arg1: memref<8x32xf32, #tpu.memory_space<vmem>>, %arg2: memref<8x32xf32, #tpu.memory_space<vmem>>, %arg3: memref<8x16xf32, #tpu.memory_space<vmem>>, %arg4: memref<8x14xf32, #tpu.memory_space<vmem>>, %arg5: memref<32x16xf32, #tpu.memory_space<vmem>>, %arg6: memref<1x16xf32, #tpu.memory_space<vmem>>, %arg7: memref<16x14xf32, #tpu.memory_space<vmem>>, %arg8: memref<1x14xf32, #tpu.memory_space<vmem>>, %arg9: memref<14x12xf32, #tpu.memory_space<vmem>>, %arg10: memref<1x12xf32, #tpu.memory_space<vmem>>, %arg11: memref<12x32xf32, #tpu.memory_space<vmem>>, %arg12: memref<1x32xf32, #tpu.memory_space<vmem>>, %arg13: memref<8x32xf32, #tpu.memory_space<vmem>>) attributes {dimension_semantics = [#tpu.dimension_semantics<parallel>], iteration_bounds = array<i64: 1>, scalar_prefetch = 0 : i64, scratch_operands = 0 : i64, tpu.core_type = #tpu.core_type<tc>, window_params = [{transform_indices = @transform_0, window_bounds = array<i64: 8, 32>}, {transform_indices = @transform_1, window_bounds = array<i64: 8, 32>}, {transform_indices = @transform_2, window_bounds = array<i64: 8, 16>}, {transform_indices = @transform_3, window_bounds = array<i64: 8, 14>}, {pipeline_mode = #tpu.pipeline_mode<synchronous>, transform_indices = @transform_4, window_bounds = array<i64: 32, 16>}, {pipeline_mode = #tpu.pipeline_mode<synchronous>, transform_indices = @transform_5, window_bounds = array<i64: 1, 16>}, {pipeline_mode = #tpu.pipeline_mode<synchronous>, transform_indices = @transform_6, window_bounds = array<i64: 16, 14>}, {pipeline_mode = #tpu.pipeline_mode<synchronous>, transform_indices = @transform_7, window_bounds = array<i64: 1, 14>}, {pipeline_mode = #tpu.pipeline_mode<synchronous>, transform_indices = @transform_8, window_bounds = array<i64: 14, 12>}, {pipeline_mode = #tpu.pipeline_mode<synchronous>, transform_indices = @transform_9, window_bounds = array<i64: 1, 12>}, {pipeline_mode = #tpu.pipeline_mode<synchronous>, transform_indices = @transform_10, window_bounds = array<i64: 12, 32>}, {pipeline_mode = #tpu.pipeline_mode<synchronous>, transform_indices = @transform_11, window_bounds = array<i64: 1, 32>}, {transform_indices = @transform_12, window_bounds = array<i64: 8, 32>}]} {
    %c0 = arith.constant 0 : index
    %c0_0 = arith.constant 0 : index
    %0 = vector.load %arg1[%c0, %c0_0] : memref<8x32xf32, #tpu.memory_space<vmem>>, vector<8x32xf32>
    %1 = vector.shape_cast %0 : vector<8x32xf32> to vector<1x8x32xf32>
    %cst = arith.constant dense<0.000000e+00> : vector<1xf32>
    %2 = vector.multi_reduction <add>, %1, %cst [1, 2] : vector<1x8x32xf32> to vector<1xf32>
    %3 = vector.shape_cast %2 : vector<1xf32> to vector<1x1x1xf32>
    %4 = vector.extract %3[0, 0, 0] : f32 from vector<1x1x1xf32>
    %cst_1 = arith.constant 2.560000e+02 : f32
    %5 = arith.divf %4, %cst_1 : f32
    %6 = vector.broadcast %5 : f32 to vector<8x32xf32>
    %7 = arith.subf %0, %6 : vector<8x32xf32>
    %8 = arith.mulf %7, %7 : vector<8x32xf32>
    %9 = vector.shape_cast %8 : vector<8x32xf32> to vector<1x8x32xf32>
    %cst_2 = arith.constant dense<0.000000e+00> : vector<1xf32>
    %10 = vector.multi_reduction <add>, %9, %cst_2 [1, 2] : vector<1x8x32xf32> to vector<1xf32>
    %11 = vector.shape_cast %10 : vector<1xf32> to vector<1x1x1xf32>
    %12 = vector.extract %11[0, 0, 0] : f32 from vector<1x1x1xf32>
    %cst_3 = arith.constant 2.550000e+02 : f32
    %13 = arith.divf %12, %cst_3 : f32
    %cst_4 = arith.constant 0.000000e+00 : f32
    %14 = arith.maximumf %13, %cst_4 : f32
    %15 = math.sqrt %14 : f32
    %c0_5 = arith.constant 0 : index
    %c0_6 = arith.constant 0 : index
    %16 = vector.load %arg2[%c0_5, %c0_6] : memref<8x32xf32, #tpu.memory_space<vmem>>, vector<8x32xf32>
    %cst_7 = arith.constant 5.000000e-02 : f32
    %17 = arith.mulf %15, %cst_7 : f32
    %18 = vector.broadcast %17 : f32 to vector<8x32xf32>
    %19 = arith.mulf %16, %18 : vector<8x32xf32>
    %20 = arith.addf %0, %19 : vector<8x32xf32>
    %c0_8 = arith.constant 0 : index
    %c0_9 = arith.constant 0 : index
    %21 = vector.load %arg5[%c0_8, %c0_9] : memref<32x16xf32, #tpu.memory_space<vmem>>, vector<32x16xf32>
    %cst_10 = arith.constant dense<0.000000e+00> : vector<8x16xf32>
    %22 = tpu.matmul %20, %21, %cst_10 {dimension_numbers = #tpu.dot_dimension_numbers<[1], [0], [0], [1], [0, 0, 1, 1], [], []>} : vector<8x32xf32>, vector<32x16xf32>, vector<8x16xf32> -> vector<8x16xf32>
    %c0_11 = arith.constant 0 : index
    %c0_12 = arith.constant 0 : index
    %23 = vector.load %arg6[%c0_11, %c0_12] : memref<1x16xf32, #tpu.memory_space<vmem>>, vector<1x16xf32>
    %24 = vector.broadcast %23 : vector<1x16xf32> to vector<8x16xf32>
    %25 = arith.addf %22, %24 : vector<8x16xf32>
    %cst_13 = arith.constant 0.000000e+00 : f32
    %26 = vector.broadcast %cst_13 : f32 to vector<8x16xf32>
    %27 = arith.maximumf %25, %26 : vector<8x16xf32>
    %28 = vector.shape_cast %27 : vector<8x16xf32> to vector<1x8x16xf32>
    %cst_14 = arith.constant dense<0.000000e+00> : vector<1xf32>
    %29 = vector.multi_reduction <add>, %28, %cst_14 [1, 2] : vector<1x8x16xf32> to vector<1xf32>
    %30 = vector.shape_cast %29 : vector<1xf32> to vector<1x1x1xf32>
    %31 = vector.extract %30[0, 0, 0] : f32 from vector<1x1x1xf32>
    %cst_15 = arith.constant 1.280000e+02 : f32
    %32 = arith.divf %31, %cst_15 : f32
    %33 = vector.broadcast %32 : f32 to vector<8x16xf32>
    %34 = arith.subf %27, %33 : vector<8x16xf32>
    %35 = arith.mulf %34, %34 : vector<8x16xf32>
    %36 = vector.shape_cast %35 : vector<8x16xf32> to vector<1x8x16xf32>
    %cst_16 = arith.constant dense<0.000000e+00> : vector<1xf32>
    %37 = vector.multi_reduction <add>, %36, %cst_16 [1, 2] : vector<1x8x16xf32> to vector<1xf32>
    %38 = vector.shape_cast %37 : vector<1xf32> to vector<1x1x1xf32>
    %39 = vector.extract %38[0, 0, 0] : f32 from vector<1x1x1xf32>
    %cst_17 = arith.constant 1.270000e+02 : f32
    %40 = arith.divf %39, %cst_17 : f32
    %cst_18 = arith.constant 0.000000e+00 : f32
    %41 = arith.maximumf %40, %cst_18 : f32
    %42 = math.sqrt %41 : f32
    %c0_19 = arith.constant 0 : index
    %c0_20 = arith.constant 0 : index
    %43 = vector.load %arg3[%c0_19, %c0_20] : memref<8x16xf32, #tpu.memory_space<vmem>>, vector<8x16xf32>
    %cst_21 = arith.constant 5.000000e-02 : f32
    %44 = arith.mulf %42, %cst_21 : f32
    %45 = vector.broadcast %44 : f32 to vector<8x16xf32>
    %46 = arith.mulf %43, %45 : vector<8x16xf32>
    %47 = arith.addf %27, %46 : vector<8x16xf32>
    %c0_22 = arith.constant 0 : index
    %c0_23 = arith.constant 0 : index
    %48 = vector.load %arg7[%c0_22, %c0_23] : memref<16x14xf32, #tpu.memory_space<vmem>>, vector<16x14xf32>
    %cst_24 = arith.constant dense<0.000000e+00> : vector<8x14xf32>
    %49 = tpu.matmul %47, %48, %cst_24 {dimension_numbers = #tpu.dot_dimension_numbers<[1], [0], [0], [1], [0, 0, 1, 1], [], []>} : vector<8x16xf32>, vector<16x14xf32>, vector<8x14xf32> -> vector<8x14xf32>
    %c0_25 = arith.constant 0 : index
    %c0_26 = arith.constant 0 : index
    %50 = vector.load %arg8[%c0_25, %c0_26] : memref<1x14xf32, #tpu.memory_space<vmem>>, vector<1x14xf32>
    %51 = vector.broadcast %50 : vector<1x14xf32> to vector<8x14xf32>
    %52 = arith.addf %49, %51 : vector<8x14xf32>
    %cst_27 = arith.constant 0.000000e+00 : f32
    %53 = vector.broadcast %cst_27 : f32 to vector<8x14xf32>
    %54 = arith.maximumf %52, %53 : vector<8x14xf32>
    %55 = vector.shape_cast %54 : vector<8x14xf32> to vector<1x8x14xf32>
    %cst_28 = arith.constant dense<0.000000e+00> : vector<1xf32>
    %56 = vector.multi_reduction <add>, %55, %cst_28 [1, 2] : vector<1x8x14xf32> to vector<1xf32>
    %57 = vector.shape_cast %56 : vector<1xf32> to vector<1x1x1xf32>
    %58 = vector.extract %57[0, 0, 0] : f32 from vector<1x1x1xf32>
    %cst_29 = arith.constant 1.120000e+02 : f32
    %59 = arith.divf %58, %cst_29 : f32
    %60 = vector.broadcast %59 : f32 to vector<8x14xf32>
    %61 = arith.subf %54, %60 : vector<8x14xf32>
    %62 = arith.mulf %61, %61 : vector<8x14xf32>
    %63 = vector.shape_cast %62 : vector<8x14xf32> to vector<1x8x14xf32>
    %cst_30 = arith.constant dense<0.000000e+00> : vector<1xf32>
    %64 = vector.multi_reduction <add>, %63, %cst_30 [1, 2] : vector<1x8x14xf32> to vector<1xf32>
    %65 = vector.shape_cast %64 : vector<1xf32> to vector<1x1x1xf32>
    %66 = vector.extract %65[0, 0, 0] : f32 from vector<1x1x1xf32>
    %cst_31 = arith.constant 1.110000e+02 : f32
    %67 = arith.divf %66, %cst_31 : f32
    %cst_32 = arith.constant 0.000000e+00 : f32
    %68 = arith.maximumf %67, %cst_32 : f32
    %69 = math.sqrt %68 : f32
    %c0_33 = arith.constant 0 : index
    %c0_34 = arith.constant 0 : index
    %70 = vector.load %arg4[%c0_33, %c0_34] : memref<8x14xf32, #tpu.memory_space<vmem>>, vector<8x14xf32>
    %cst_35 = arith.constant 5.000000e-02 : f32
    %71 = arith.mulf %69, %cst_35 : f32
    %72 = vector.broadcast %71 : f32 to vector<8x14xf32>
    %73 = arith.mulf %70, %72 : vector<8x14xf32>
    %74 = arith.addf %54, %73 : vector<8x14xf32>
    %c0_36 = arith.constant 0 : index
    %c0_37 = arith.constant 0 : index
    %75 = vector.load %arg9[%c0_36, %c0_37] : memref<14x12xf32, #tpu.memory_space<vmem>>, vector<14x12xf32>
    %cst_38 = arith.constant dense<0.000000e+00> : vector<8x12xf32>
    %76 = tpu.matmul %74, %75, %cst_38 {dimension_numbers = #tpu.dot_dimension_numbers<[1], [0], [0], [1], [0, 0, 1, 1], [], []>} : vector<8x14xf32>, vector<14x12xf32>, vector<8x12xf32> -> vector<8x12xf32>
    %c0_39 = arith.constant 0 : index
    %c0_40 = arith.constant 0 : index
    %77 = vector.load %arg10[%c0_39, %c0_40] : memref<1x12xf32, #tpu.memory_space<vmem>>, vector<1x12xf32>
    %78 = vector.broadcast %77 : vector<1x12xf32> to vector<8x12xf32>
    %79 = arith.addf %76, %78 : vector<8x12xf32>
    %cst_41 = arith.constant 0.000000e+00 : f32
    %80 = vector.broadcast %cst_41 : f32 to vector<8x12xf32>
    %81 = arith.maximumf %79, %80 : vector<8x12xf32>
    %c0_42 = arith.constant 0 : index
    %c0_43 = arith.constant 0 : index
    %82 = vector.load %arg11[%c0_42, %c0_43] : memref<12x32xf32, #tpu.memory_space<vmem>>, vector<12x32xf32>
    %cst_44 = arith.constant dense<0.000000e+00> : vector<8x32xf32>
    %83 = tpu.matmul %81, %82, %cst_44 {dimension_numbers = #tpu.dot_dimension_numbers<[1], [0], [0], [1], [0, 0, 1, 1], [], []>} : vector<8x12xf32>, vector<12x32xf32>, vector<8x32xf32> -> vector<8x32xf32>
    %c0_45 = arith.constant 0 : index
    %c0_46 = arith.constant 0 : index
    %84 = vector.load %arg12[%c0_45, %c0_46] : memref<1x32xf32, #tpu.memory_space<vmem>>, vector<1x32xf32>
    %85 = vector.broadcast %84 : vector<1x32xf32> to vector<8x32xf32>
    %86 = arith.addf %83, %85 : vector<8x32xf32>
    %c0_47 = arith.constant 0 : index
    %c0_48 = arith.constant 0 : index
    %87 = vector.load %arg13[%c0_47, %c0_48] : memref<8x32xf32, #tpu.memory_space<vmem>>, vector<8x32xf32>
    tpu.vector_store %arg13[%c0_47, %c0_48], %86 {strides = array<i32>} : memref<8x32xf32, #tpu.memory_space<vmem>>, vector<8x32xf32>,
    return
  }
  func.func @transform_0(%arg0: i32) -> (i32, i32) {
    %c0_i32 = arith.constant 0 : i32
    %c0_i32_0 = arith.constant 0 : i32
    return %arg0, %c0_i32 : i32, i32
  }
  func.func @transform_1(%arg0: i32) -> (i32, i32) {
    %c0_i32 = arith.constant 0 : i32
    %c0_i32_0 = arith.constant 0 : i32
    return %arg0, %c0_i32 : i32, i32
  }
  func.func @transform_2(%arg0: i32) -> (i32, i32) {
    %c0_i32 = arith.constant 0 : i32
    %c0_i32_0 = arith.constant 0 : i32
    return %arg0, %c0_i32 : i32, i32
  }
  func.func @transform_3(%arg0: i32) -> (i32, i32) {
    %c0_i32 = arith.constant 0 : i32
    %c0_i32_0 = arith.constant 0 : i32
    return %arg0, %c0_i32 : i32, i32
  }
  func.func @transform_4(%arg0: i32) -> (i32, i32) {
    %c0_i32 = arith.constant 0 : i32
    %c0_i32_0 = arith.constant 0 : i32
    %c0_i32_1 = arith.constant 0 : i32
    return %c0_i32, %c0_i32_0 : i32, i32
  }
  func.func @transform_5(%arg0: i32) -> (i32, i32) {
    %c0_i32 = arith.constant 0 : i32
    %c0_i32_0 = arith.constant 0 : i32
    %c0_i32_1 = arith.constant 0 : i32
    return %c0_i32, %c0_i32_0 : i32, i32
  }
  func.func @transform_6(%arg0: i32) -> (i32, i32) {
    %c0_i32 = arith.constant 0 : i32
    %c0_i32_0 = arith.constant 0 : i32
    %c0_i32_1 = arith.constant 0 : i32
    return %c0_i32, %c0_i32_0 : i32, i32
  }
  func.func @transform_7(%arg0: i32) -> (i32, i32) {
    %c0_i32 = arith.constant 0 : i32
    %c0_i32_0 = arith.constant 0 : i32
    %c0_i32_1 = arith.constant 0 : i32
    return %c0_i32, %c0_i32_0 : i32, i32
  }
  func.func @transform_8(%arg0: i32) -> (i32, i32) {
    %c0_i32 = arith.constant 0 : i32
    %c0_i32_0 = arith.constant 0 : i32
    %c0_i32_1 = arith.constant 0 : i32
    return %c0_i32, %c0_i32_0 : i32, i32
  }
  func.func @transform_9(%arg0: i32) -> (i32, i32) {
    %c0_i32 = arith.constant 0 : i32
    %c0_i32_0 = arith.constant 0 : i32
    %c0_i32_1 = arith.constant 0 : i32
    return %c0_i32, %c0_i32_0 : i32, i32
  }
  func.func @transform_10(%arg0: i32) -> (i32, i32) {
    %c0_i32 = arith.constant 0 : i32
    %c0_i32_0 = arith.constant 0 : i32
    %c0_i32_1 = arith.constant 0 : i32
    return %c0_i32, %c0_i32_0 : i32, i32
  }
  func.func @transform_11(%arg0: i32) -> (i32, i32) {
    %c0_i32 = arith.constant 0 : i32
    %c0_i32_0 = arith.constant 0 : i32
    %c0_i32_1 = arith.constant 0 : i32
    return %c0_i32, %c0_i32_0 : i32, i32
  }
  func.func @transform_12(%arg0: i32) -> (i32, i32) {
    %c0_i32 = arith.constant 0 : i32
    %c0_i32_0 = arith.constant 0 : i32
    return %arg0, %c0_i32 : i32, i32
  }
}

</mosaic_0001>

<bundles_post_ra>
// kernel: tpu_custom_call.1
= control target key start
LH: loop header
LB: loop body
LE: loop exit
PB: predicated region body
PF: predicated region fallthrough
CT: control target
= control target key end

     0   :  { %17 = vsyncpa [#allocation3], 0  ;;  %s947_s0 = inlined_call_operand.hbm [shape: f32[8,32], index: 0, kind: input, shape index: {}]   ;;  %s948_s1 = inlined_call_operand.hbm [shape: f32[8,32], index: 1, kind: input, shape index: {}]   ;;  %s949_s2 = inlined_call_operand.hbm [shape: f32[8,16], index: 2, kind: input, shape index: {}]   ;;  %s950_s3 = inlined_call_operand.hbm [shape: f32[8,14], index: 3, kind: input, shape index: {}]   ;;  %s951_s4 = inlined_call_operand.vmem [shape: f32[32,16], index: 4, kind: input, shape index: {}]   ;;  %s952_s5 = inlined_call_operand.vmem [shape: f32[1,16], index: 5, kind: input, shape index: {}]   ;;  %s953_s6 = inlined_call_operand.vmem [shape: f32[16,14], index: 6, kind: input, shape index: {}]   ;;  %s954_s7 = inlined_call_operand.vmem [shape: f32[1,14], index: 7, kind: input, shape index: {}]   ;;  %s955_s8 = inlined_call_operand.vmem [shape: f32[14,12], index: 8, kind: input, shape index: {}]   ;;  %s956_s9 = inlined_call_operand.vmem [shape: f32[1,12], index: 9, kind: input, shape index: {}]   ;;  %s957_s10 = inlined_call_operand.vmem [shape: f32[12,32], index: 10, kind: input, shape index: {}]   ;;  %s958_s11 = inlined_call_operand.vmem [shape: f32[1,32], index: 11, kind: input, shape index: {}]   ;;  %s959_s12 = inlined_call_operand.hbm [shape: f32[8,32], index: 12, kind: output, shape index: {}]  }
   0x1   :  { %18 = vsyncpa [#allocation6], 0 }
   0x2   :  { %19 = vsyncpa [#allocation9], 0 }
   0x3   :  { %20 = vsyncpa [#allocation4], 0  ;;  %s781_s21 = smov [#allocation5]   ;;  %s782_s23 = smov [#allocation2]  }
   0x4   :  { %s37_s22 = sshll.u32 %s781_s21, 4  ;;  %s27_s24 = sshll.u32 %s782_s23, 4  ;;  %s38_s22 = int_to_ptr.vmem [resolvable:$true] %s37_s22  ;;  %s28_s24 = int_to_ptr.vmem [resolvable:$true] %s27_s24 }
   0x5   :  { %s681_s25 = scalar_lea.vmem %s38_s22, 128  ;;  %p686_p1 = scmp.lt.s32.totalorder %s38_s22, %s38_s22 }
   0x6   :  { %p682_p0 = scmp.ne.s32.totalorder %s38_s22, %s681_s25  ;;  %p687_p2 = scmp.lt.s32.totalorder %s681_s25, %s681_s25 }
   0x8   :  { %p688_p3 = por %p687_p2, %p686_p1 }
   0xa   :  { %p689_p4 = pnand %p688_p3, %p682_p0 }
   0xc   :  { %692 = shalt.err (!%p689_p4)
}
   0xd   :  { %40 = dma.hbm_to_vmem [thread:$0]  %s948_s1, 128, %s38_s22, [#allocation6]  }
   0xe   :  { %s701_s28 = scalar_lea.vmem %s28_s24, 128  ;;  %p706_p6 = scmp.lt.s32.totalorder %s28_s24, %s28_s24 }
   0xf   :  { %p702_p5 = scmp.ne.s32.totalorder %s28_s24, %s701_s28  ;;  %p707_p7 = scmp.lt.s32.totalorder %s701_s28, %s701_s28 }
  0x11   :  { %p708_p8 = por %p707_p7, %p706_p6 }
  0x13   :  { %p709_p9 = pnand %p708_p8, %p702_p5 }
  0x15   :  { %712 = shalt.err (!%p709_p9)
}
  0x16   :  { %30 = dma.hbm_to_vmem [thread:$0]  %s947_s0, 128, %s28_s24, [#allocation3]  }
  0x17   :  { %s783_s13 = smov [#allocation7]   ;;  %s784_s15 = smov [#allocation8]  }
  0x18   :  { %s47_s14 = sshll.u32 %s783_s13, 4  ;;  %s57_s16 = sshll.u32 %s784_s15, 4  ;;  %s48_s14 = int_to_ptr.vmem [resolvable:$true] %s47_s14  ;;  %s58_s16 = int_to_ptr.vmem [resolvable:$true] %s57_s16 }
  0x19   :  { %s721_s17 = scalar_lea.vmem %s48_s14, 128  ;;  %p726_p11 = scmp.lt.s32.totalorder %s48_s14, %s48_s14 }
  0x1a   :  { %p722_p10 = scmp.ne.s32.totalorder %s48_s14, %s721_s17  ;;  %p727_p12 = scmp.lt.s32.totalorder %s721_s17, %s721_s17 }
  0x1c   :  { %p728_p13 = por %p727_p12, %p726_p11 }
  0x1e   :  { %p729_p0 = pnand %p728_p13, %p722_p10 }
  0x20   :  { %732 = shalt.err (!%p729_p0)
}
  0x21   :  { %50 = dma.hbm_to_vmem [thread:$0]  %s949_s2, 128, %s48_s14, [#allocation6]  }
  0x22   :  { %s741_s19 = scalar_lea.vmem %s58_s16, 128  ;;  %p746_p2 = scmp.lt.s32.totalorder %s58_s16, %s58_s16 }
  0x23   :  { %p742_p1 = scmp.ne.s32.totalorder %s58_s16, %s741_s19  ;;  %p747_p3 = scmp.lt.s32.totalorder %s741_s19, %s741_s19 }
  0x25   :  { %p748_p4 = por %p747_p3, %p746_p2 }
  0x27   :  { %p749_p5 = pnand %p748_p4, %p742_p1 }
  0x29   :  { %752 = shalt.err (!%p749_p5)
}
  0x2a   :  { %60 = dma.hbm_to_vmem [thread:$0]  %s950_s3, 128, %s58_s16, [#allocation9]  }
  0x2b   :  { %773 = dma.done.wait [#allocation3], 128  }
  0x2c   :  { %774 = vsyncadd [#allocation3], 4294967168 }
  0x2d   :  { %775 = dma.done.wait [#allocation6], 256  }
  0x2e   :  { %776 = vsyncadd [#allocation6], 4294967040 }
  0x2f   :  { %777 = dma.done.wait [#allocation9], 128  }
  0x30   :  { %778 = vsyncadd [#allocation9], 4294967168  ;;  %vm90_vm0 = vcmask 261120   ;;  %v866_v0 = vld [vmem:[#allocation2] sm:$0xff]  ;;  %v785_v17 = vmov 0.0   ;;  %v138_v18 = vld [vmem:[%s951_s4 + $0x18] sm:$0xff] }
  0x31   :  { %v91_v1 = vsel %vm90_vm0, %v866_v0, 0.0  ;;  %609 = vmatprep.subr.mxu0 %v785_v17  ;;  %620 = vmatprep.subr.mxu1 %v785_v17  ;;  %v137_v20 = vld [vmem:[%s951_s4 + $0x10] sm:$0xff]  ;;  %v136_v22 = vld [vmem:[%s951_s4 + $0x8] sm:$0xff]  ;;  %v135_v24 = vld [vmem:[%s951_s4] sm:$0xff]  ;;  %vm786_vm1 = vmmov 0   ;;  %s787_s13 = smov 0.0  }
  0x32   :  { %92 = vadd.xlane.f32.xlu0 %v91_v1  ;;  %610 = vmatpush3.msra.mxu0 %v138_v18  ;;  %v130_v31 = vld [vmem:[#allocation5] sm:$0xff]  ;;  %v585_v35 = vld [vmem:[%s952_s5] ss:$0 sm:$0xff]  ;;  %vm220_vm4 = vcmask 130048   ;;  %vm348_vm7 = vcmask 113664   ;;  %vm405_vm8 = vcmask 1045504  }
  0x33   :  { %611 = vmatprep.subr.mxu0 %v785_v17  ;;  %617 = vmatprep.mubr.msk.f32.mxu0 %vm786_vm1, %v785_v17  ;;  %v266_v58 = vld [vmem:[%s953_s6 + $0x8] sm:$0xff]  ;;  %v265_v60 = vld [vmem:[%s953_s6] sm:$0xff]  ;;  %vm493_vm11 = vcmask 1043456   ;;  %vm489_vm12 = vcmask 97280   ;;  %s788_s20 = smov [#allocation10]  }
  0x34   :  { %612 = vmatpush3.msra.mxu0 %v137_v20  ;;  %624 = vmatprep.mubr.msk.f32.mxu1 %vm786_vm1, %v785_v17 }
  0x35   :  { %613 = vmatprep.subr.mxu0 %v785_v17  ;;  %621 = vmatpush3.msra.mxu1 %v266_v58 }
  0x36   :  { %614 = vmatpush3.msra.mxu0 %v136_v22  ;;  %622 = vmatprep.subr.mxu1 %v785_v17 }
  0x37   :  { %615 = vmatprep.subr.mxu0 %v785_v17  ;;  %623 = vmatpush3.msra.mxu1 %v265_v60 }
  0x38   :  { %616 = vmatpush3.msra.mxu0 %v135_v24  ;;  %627 = vmatprep.subr.mxu1 %v785_v17 }
  0x39   :  { %634 = vmatprep.subr.mxu0 %v785_v17 }
  0xbb   :  { %v93_v2 = vpop.xlane.xlu0 %92 }
  0xbc   :  { %v94_v3 = vrot.slane %v93_v2, 4 }
  0xbe   :  { %v95_v4 = vadd.f32 %v94_v3, %v93_v2  ;;  %v260_v3 = vld [vmem:[#allocation7] sm:$0xff] }
  0xc0   :  { %v96_v5 = vrot.slane %v95_v4, 2 }
  0xc2   :  { %v97_v6 = vadd.f32 %v96_v5, %v95_v4 }
  0xc4   :  { %v98_v7 = vrot.slane %v97_v6, 1 }
  0xc6   :  { %v99_v8 = vadd.f32 %v98_v7, %v97_v6  ;;  %v587_v7 = vld [vmem:[%s954_s7] ss:$0 sm:$0xff] }
  0xc8   :  { %641 = vpush %v99_v8 }
  0xf9   :  { %s642_s2 = spop %641 }
  0xfa   :  { %s103_s3 = smul.f32 0.00390625, %s642_s2 }
  0xfc   :  { %v104_v9 = vstv %s103_s3 }
  0xfd   :  { %v105_v10 = vsub.f32 %v866_v0, %v104_v9 }
  0xff   :  { %v106_v11 = vmul.f32 %v105_v10, %v105_v10 }
 0x101   :  { %v107_v12 = vsel %vm90_vm0, %v106_v11, 0.0 }
 0x102   :  { %108 = vadd.xlane.f32.xlu0 %v107_v12 }
 0x18b   :  { %v109_v13 = vpop.xlane.xlu0 %108 }
 0x18c   :  { %v110_v14 = vrot.slane %v109_v13, 4 }
 0x18e   :  { %v111_v15 = vadd.f32 %v110_v14, %v109_v13 }
 0x190   :  { %v112_v16 = vrot.slane %v111_v15, 2 }
 0x192   :  { %v113_v19 = vadd.f32 %v112_v16, %v111_v15 }
 0x194   :  { %v114_v21 = vrot.slane %v113_v19, 1 }
 0x196   :  { %v115_v23 = vadd.f32 %v114_v21, %v113_v19 }
 0x198   :  { %643 = vpush %v115_v23 }
 0x1c9   :  { %s644_s29 = spop %643 }
 0x1ca   :  { %s119_s30 = smul.f32 0.003921569, %s644_s29 }
 0x1cc   :  { %s120_s14 = smax.f32 %s787_s13, %s119_s30 }
 0x1cd   :  { %v121_v25 = vstv %s120_s14 }
 0x1ce   :  { %667 = vrsqrt.f32 %v121_v25  ;;  %vm124_vm2 = vcmp.eq.f32.partialorder %v121_v25, inf  ;;  %v127_v28 = vand.u32 2147483648, %v121_v25  ;;  %vm126_vm3 = vcmp.eq.f32.partialorder %v121_v25, 0.0 }
 0x1db   :  { %v668_v26 = vpop.eup %667 }
 0x1dc   :  { %v123_v27 = vmul.f32 %v668_v26, %v121_v25 }
 0x1de   :  { %v125_v29 = vsel %vm124_vm2, %v121_v25, %v123_v27 }
 0x1df   :  { %v128_v30 = vsel %vm126_vm3, %v127_v28, %v125_v29 }
 0x1e0   :  { %645 = vpush %v128_v30 }
 0x211   :  { %s646_s4 = spop %645 }
 0x212   :  { %s131_s15 = smul.f32 0.05, %s646_s4 }
 0x214   :  { %v132_v32 = vstv %s131_s15 }
 0x215   :  { %v133_v33 = vmul.f32 %v132_v32, %v130_v31  ;;  %v394_v31 = vld [vmem:[%s955_s8 + $0x8] sm:$0x3f] }
 0x217   :  { %v134_v34 = vadd.f32 %v133_v33, %v866_v0  ;;  %v393_v33 = vld [vmem:[%s955_s8] sm:$0xff] }
 0x219   :  { %618 = vmatmul.mubr.msk.f32.vlgmr.msra.gmra.mxu0 %vm90_vm0, %v134_v34 }
 0x21a   :  { %638 = vmatprep.mubr.msk.f32.mxu0 %vm786_vm1, %v785_v17 }
 0x2d9   :  { %v215_v36 = vpop.f32.mrf.mxu0 }
 0x2da   :  { %v216_v37 = vadd.f32 %v585_v35, %v215_v36 }
 0x2db   :  { %v619_v38 = vpop.f32.mrf.mxu0 }
 0x2dc   :  { %v219_v39 = vmax.f32 %v216_v37, 0.0 }
 0x2de   :  { %v221_v40 = vsel %vm220_vm4, %v219_v39, 0.0 }
 0x2df   :  { %222 = vadd.xlane.f32.xlu1 %v221_v40  ;;  %v388_v40 = vld [vmem:[#allocation8] sm:$0xff] }
 0x368   :  { %v223_v41 = vpop.xlane.xlu1 %222 }
 0x369   :  { %v224_v42 = vrot.slane %v223_v41, 4 }
 0x36b   :  { %v225_v43 = vadd.f32 %v224_v42, %v223_v41 }
 0x36d   :  { %v226_v44 = vrot.slane %v225_v43, 2 }
 0x36f   :  { %v227_v45 = vadd.f32 %v226_v44, %v225_v43  ;;  %v481_v44 = vld [vmem:[%s957_s10 + $0x8] sm:$0xf] }
 0x370   :  { %635 = vmatpush3.msk.msra.mxu0 %vm493_vm11, %v481_v44 }
 0x371   :  { %v228_v46 = vrot.slane %v227_v45, 1  ;;  %636 = vmatprep.subr.mxu0 %v785_v17 }
 0x373   :  { %v229_v47 = vadd.f32 %v228_v46, %v227_v45  ;;  %v480_v45 = vld [vmem:[%s957_s10] sm:$0xff] }
 0x374   :  { %637 = vmatpush3.msra.mxu0 %v480_v45  ;;  %v589_v46 = vld [vmem:[%s956_s9] ss:$0 sm:$0xff] }
 0x375   :  { %647 = vpush %v229_v47 }
 0x3a6   :  { %s648_s1 = spop %647 }
 0x3a7   :  { %s233_s18 = smul.f32 0.0078125, %s648_s1 }
 0x3a9   :  { %v234_v48 = vstv %s233_s18 }
 0x3aa   :  { %v235_v49 = vsub.f32 %v219_v39, %v234_v48 }
 0x3ac   :  { %v236_v50 = vmul.f32 %v235_v49, %v235_v49 }
 0x3ae   :  { %v237_v51 = vsel %vm220_vm4, %v236_v50, 0.0 }
 0x3af   :  { %238 = vadd.xlane.f32.xlu1 %v237_v51  ;;  %v592_v51 = vld [vmem:[%s958_s11] ss:$0 sm:$0xff] }
 0x438   :  { %v239_v52 = vpop.xlane.xlu1 %238 }
 0x439   :  { %v240_v53 = vrot.slane %v239_v52, 4 }
 0x43b   :  { %v241_v54 = vadd.f32 %v240_v53, %v239_v52 }
 0x43d   :  { %v242_v55 = vrot.slane %v241_v54, 2 }
 0x43f   :  { %v243_v56 = vadd.f32 %v242_v55, %v241_v54 }
 0x441   :  { %v244_v57 = vrot.slane %v243_v56, 1 }
 0x443   :  { %v245_v59 = vadd.f32 %v244_v57, %v243_v56 }
 0x445   :  { %649 = vpush %v245_v59 }
 0x476   :  { %s650_s2 = spop %649 }
 0x477   :  { %s249_s3 = smul.f32 0.007874016, %s650_s2  ;;  %s574_s2 = sshll.u32 %s788_s20, 4  ;;  %s575_s2 = int_to_ptr.vmem [resolvable:$true] %s574_s2 }
 0x478   :  { %s753_s10 = scalar_lea.vmem %s575_s2, 128  ;;  %p758_p7 = scmp.lt.s32.totalorder %s575_s2, %s575_s2 }
 0x479   :  { %s250_s21 = smax.f32 %s787_s13, %s249_s3  ;;  %p754_p6 = scmp.ne.s32.totalorder %s575_s2, %s753_s10 }
 0x47a   :  { %v251_v61 = vstv %s250_s21  ;;  %p759_p8 = scmp.lt.s32.totalorder %s753_s10, %s753_s10 }
 0x47b   :  { %669 = vrsqrt.f32 %v251_v61  ;;  %vm254_vm5 = vcmp.eq.f32.partialorder %v251_v61, inf  ;;  %v257_v0 = vand.u32 2147483648, %v251_v61  ;;  %vm256_vm6 = vcmp.eq.f32.partialorder %v251_v61, 0.0 }
 0x47c   :  { %p760_p9 = por %p759_p8, %p758_p7 }
 0x47e   :  { %p761_p10 = pnand %p760_p9, %p754_p6 }
 0x488   :  { %v670_v62 = vpop.eup %669 }
 0x489   :  { %v253_v63 = vmul.f32 %v670_v62, %v251_v61 }
 0x48b   :  { %v255_v1 = vsel %vm254_vm5, %v251_v61, %v253_v63 }
 0x48c   :  { %v258_v2 = vsel %vm256_vm6, %v257_v0, %v255_v1 }
 0x48d   :  { %651 = vpush %v258_v2 }
 0x4be   :  { %s652_s22 = spop %651 }
 0x4bf   :  { %s261_s6 = smul.f32 0.05, %s652_s22 }
 0x4c1   :  { %v262_v4 = vstv %s261_s6 }
 0x4c2   :  { %v263_v5 = vmul.f32 %v262_v4, %v260_v3 }
 0x4c4   :  { %v264_v6 = vadd.f32 %v263_v5, %v219_v39 }
 0x4c6   :  { %625 = vmatmul.mubr.msk.f32.vlgmr.msra.gmra.mxu1 %vm220_vm4, %v264_v6 }
 0x4c7   :  { %631 = vmatprep.mubr.msk.f32.mxu1 %vm786_vm1, %v785_v17  ;;  %628 = vmatpush3.msk.msra.mxu1 %vm405_vm8, %v394_v31 }
 0x4c8   :  { %629 = vmatprep.subr.mxu1 %v785_v17 }
 0x4c9   :  { %630 = vmatpush3.msra.mxu1 %v393_v33 }
 0x586   :  { %v343_v8 = vpop.f32.mrf.mxu1 }
 0x587   :  { %v344_v9 = vadd.f32 %v587_v7, %v343_v8 }
 0x588   :  { %v626_v10 = vpop.f32.mrf.mxu1 }
 0x589   :  { %v347_v11 = vmax.f32 %v344_v9, 0.0 }
 0x58b   :  { %v349_v12 = vsel %vm348_vm7, %v347_v11, 0.0 }
 0x58c   :  { %350 = vadd.xlane.f32.xlu0 %v349_v12 }
 0x615   :  { %v351_v13 = vpop.xlane.xlu0 %350 }
 0x616   :  { %v352_v14 = vrot.slane %v351_v13, 4 }
 0x618   :  { %v353_v15 = vadd.f32 %v352_v14, %v351_v13 }
 0x61a   :  { %v354_v16 = vrot.slane %v353_v15, 2 }
 0x61c   :  { %v355_v18 = vadd.f32 %v354_v16, %v353_v15 }
 0x61e   :  { %v356_v19 = vrot.slane %v355_v18, 1 }
 0x620   :  { %v357_v20 = vadd.f32 %v356_v19, %v355_v18 }
 0x622   :  { %653 = vpush %v357_v20 }
 0x653   :  { %s654_s25 = spop %653 }
 0x654   :  { %s361_s26 = smul.f32 0.008928572, %s654_s25 }
 0x656   :  { %v362_v21 = vstv %s361_s26 }
 0x657   :  { %v363_v22 = vsub.f32 %v347_v11, %v362_v21 }
 0x659   :  { %v364_v23 = vmul.f32 %v363_v22, %v363_v22 }
 0x65b   :  { %v365_v24 = vsel %vm348_vm7, %v364_v23, 0.0 }
 0x65c   :  { %366 = vadd.xlane.f32.xlu1 %v365_v24 }
 0x6e5   :  { %v367_v25 = vpop.xlane.xlu1 %366 }
 0x6e6   :  { %v368_v26 = vrot.slane %v367_v25, 4 }
 0x6e8   :  { %v369_v27 = vadd.f32 %v368_v26, %v367_v25 }
 0x6ea   :  { %v370_v28 = vrot.slane %v369_v27, 2 }
 0x6ec   :  { %v371_v29 = vadd.f32 %v370_v28, %v369_v27 }
 0x6ee   :  { %v372_v30 = vrot.slane %v371_v29, 1 }
 0x6f0   :  { %v373_v32 = vadd.f32 %v372_v30, %v371_v29 }
 0x6f2   :  { %655 = vpush %v373_v32 }
 0x723   :  { %s656_s30 = spop %655 }
 0x724   :  { %s377_s14 = smul.f32 0.009009009, %s656_s30 }
 0x726   :  { %s378_s4 = smax.f32 %s787_s13, %s377_s14 }
 0x727   :  { %v379_v34 = vstv %s378_s4 }
 0x728   :  { %671 = vrsqrt.f32 %v379_v34  ;;  %vm382_vm9 = vcmp.eq.f32.partialorder %v379_v34, inf  ;;  %v385_v37 = vand.u32 2147483648, %v379_v34  ;;  %vm384_vm10 = vcmp.eq.f32.partialorder %v379_v34, 0.0 }
 0x735   :  { %v672_v35 = vpop.eup %671 }
 0x736   :  { %v381_v36 = vmul.f32 %v672_v35, %v379_v34 }
 0x738   :  { %v383_v38 = vsel %vm382_vm9, %v379_v34, %v381_v36 }
 0x739   :  { %v386_v39 = vsel %vm384_vm10, %v385_v37, %v383_v38 }
 0x73a   :  { %657 = vpush %v386_v39 }
 0x76b   :  { %s658_s15 = spop %657 }
 0x76c   :  { %s389_s16 = smul.f32 0.05, %s658_s15 }
 0x76e   :  { %v390_v41 = vstv %s389_s16 }
 0x76f   :  { %v391_v42 = vmul.f32 %v390_v41, %v388_v40 }
 0x771   :  { %v392_v43 = vadd.f32 %v391_v42, %v347_v11 }
 0x773   :  { %632 = vmatmul.mubr.msk.f32.vlgmr.msra.gmra.mxu1 %vm348_vm7, %v392_v43 }
 0x833   :  { %v475_v47 = vpop.f32.mrf.mxu1 }
 0x834   :  { %v476_v48 = vadd.f32 %v589_v46, %v475_v47 }
 0x835   :  { %v633_v49 = vpop.f32.mrf.mxu1 }
 0x836   :  { %v479_v50 = vmax.f32 %v476_v48, 0.0 }
 0x838   :  { %639 = vmatmul.mubr.msk.f32.vlgmr.msra.gmra.mxu0 %vm489_vm12, %v479_v50 }
 0x8f8   :  { %v563_v17 = vpop.f32.mrf.mxu0 }
 0x8f9   :  { %v564_v52 = vadd.f32 %v592_v51, %v563_v17 }
 0x8fa   :  { %v640_v53 = vpop.f32.mrf.mxu0 }
 0x8fb   :  { %567 = vst.msk [vmem:[#allocation10] sm:$0xff] %vm90_vm0, %v564_v52 }
 0x8fc   :  { %764 = shalt.err (!%p761_p10)
}
 0x8fd   :  { %577 = dma.vmem_to_hbm [thread:$0]  %s575_s2, 128, %s959_s12, [#allocation4]  }
 0x8fe   :  { %779 = dma.done.wait [#allocation4], 128  }
 0x8ff   :  { %780 = vsyncadd [#allocation4], 4294967168 }
 0x900   :  { %581 = vsyncpa [#allocation3], 1 }
 0x901   :  { %582 = vsyncpa [#allocation6], 1 }
 0x902   :  { %583 = vsyncpa [#allocation9], 1 }
 0x903   :  { %584 = vsyncpa [#allocation4], 1 }

</bundles_post_ra>
